<compile_context>
chip_gen: v7x
topology: tpu7x:2x2x1
jax: 0.10.0
libtpu: 0.0.40
codegen_flags: <defaults>
</compile_context>

<pallas_src>
import jax
import jax.numpy as jnp
from jax.experimental import pallas as pl
from jax.experimental.pallas import tpu as pltpu


# ---------------------------------------------------------------------------
# Kernel
# ---------------------------------------------------------------------------
def mlp_kernel(x_ref, w1_ref, b1_ref, w2_ref, b2_ref, w3_ref, b3_ref, o_ref):
    # x, w* are bf16; accumulate in f32 on the MXU; bias + sigmoid in f32.
    h1 = jnp.dot(x_ref[...], w1_ref[...], preferred_element_type=jnp.float32)
    h1 = jax.nn.sigmoid(h1 + b1_ref[...])

    h2 = jnp.dot(h1.astype(jnp.bfloat16), w2_ref[...],
                 preferred_element_type=jnp.float32)
    h2 = jax.nn.sigmoid(h2 + b2_ref[...])

    h3 = jnp.dot(h2.astype(jnp.bfloat16), w3_ref[...],
                 preferred_element_type=jnp.float32)
    h3 = jax.nn.sigmoid(h3 + b3_ref[...])

    # Lane-dense store: last dim is a multiple of 128 by construction.
    o_ref[...] = h3.astype(o_ref.dtype)


# ---------------------------------------------------------------------------
# Helpers
# ---------------------------------------------------------------------------
def _round_up(x, m):
    return ((x + m - 1) // m) * m


def _pad2d(a, rows, cols):
    r, c = a.shape
    return jnp.pad(a, ((0, rows - r), (0, cols - c)))


def _default_tile_b(batch):
    # >= 2 grid steps for realistic batches (v7x megacore), 16-aligned for bf16
    # sublane packing, capped at 512 rows (measured sweet spot, keeps VMEM low).
    return min(512, _round_up(max(pl.cdiv(batch, 2), 16), 16))


# ---------------------------------------------------------------------------
# Wrapper
# ---------------------------------------------------------------------------
def mlp_forward(x, params, *, tile_b=None):
    """x: [B, input_size] f32. params: w1,b1,w2,b2,w3,b3 (w: [in,out], b: [1,out])."""
    B, Din = x.shape
    H1 = params["w1"].shape[1]
    H2 = params["w2"].shape[1]
    C = params["w3"].shape[1]

    # ---- padded, MXU/lane-friendly shapes -------------------------------
    Din_p = _round_up(Din, 128)
    H1_p = _round_up(H1, 128)
    H2_p = _round_up(H2, 128)
    C_p = _round_up(C, 128)

    if tile_b is None:
        tile_b = _default_tile_b(B)
    tile_b = _round_up(tile_b, 16)
    B_p = _round_up(B, tile_b)
    grid = (B_p // tile_b,)

    # In production these paddings/casts are done once at parameter load time;
    # here it is cheap XLA glue outside the kernel.
    xp = _pad2d(x, B_p, Din_p).astype(jnp.bfloat16)
    w1 = _pad2d(params["w1"], Din_p, H1_p).astype(jnp.bfloat16)
    w2 = _pad2d(params["w2"], H1_p, H2_p).astype(jnp.bfloat16)
    w3 = _pad2d(params["w3"], H2_p, C_p).astype(jnp.bfloat16)
    b1 = _pad2d(params["b1"], 1, H1_p)  # f32
    b2 = _pad2d(params["b2"], 1, H2_p)  # f32
    b3 = _pad2d(params["b3"], 1, C_p)   # f32

    # ---- VMEM budget + cost hint ----------------------------------------
    weight_bytes = (Din_p * H1_p + H1_p * H2_p + H2_p * C_p) * 2      # bf16
    bias_bytes = (H1_p + H2_p + C_p) * 4                              # f32
    io_bytes = tile_b * (Din_p * 2 + C_p * 4)                         # x in, out
    act_bytes = tile_b * (H1_p + H2_p + C_p) * 4                      # intermediates
    est = 2 * (weight_bytes + bias_bytes + io_bytes) + act_bytes      # double-buffered
    vmem_limit = int(min(64 * 1024 * 1024,
                         max(32 * 1024 * 1024, int(est * 1.5))))

    cost = pl.CostEstimate(
        flops=2 * B_p * (Din_p * H1_p + H1_p * H2_p + H2_p * C_p),
        transcendentals=B_p * (H1_p + H2_p + C_p),
        bytes_accessed=(weight_bytes + bias_bytes
                        + B_p * Din_p * 2 + B_p * C_p * 4),
    )

    # Weights/biases are full-array blocks (constant index_map) so they stay
    # resident in VMEM across grid steps; only the batch dim is tiled.
    full = lambda arr: pl.BlockSpec(arr.shape, lambda i: (0,) * arr.ndim)

    out2d = pl.pallas_call(
        mlp_kernel,
        out_shape=jax.ShapeDtypeStruct((B_p, C_p), jnp.float32),
        grid_spec=pltpu.PrefetchScalarGridSpec(
            num_scalar_prefetch=0,
            grid=grid,
            in_specs=[
                pl.BlockSpec((tile_b, Din_p), lambda i: (i, 0)),
                full(w1), full(b1),
                full(w2), full(b2),
                full(w3), full(b3),
            ],
            out_specs=pl.BlockSpec((tile_b, C_p), lambda i: (i, 0)),
        ),
        compiler_params=pltpu.CompilerParams(
            dimension_semantics=("parallel",),
            vmem_limit_bytes=vmem_limit,
        ),
        cost_estimate=cost,
    )(xp, w1, b1, w2, b2, w3, b3)

    # Strip padding, then PyTorch's out.reshape(-1) (glue, outside the kernel).
    return out2d[:B, :C].reshape(-1)


# ---------------------------------------------------------------------------
# Params / reference
# ---------------------------------------------------------------------------
def init_params(key, input_size, hidden1_size, hidden2_size, num_classes):
    """Deterministic init; weights stored already transposed to [in, out]."""
    ks = jax.random.split(key, 6)

    def linear(kw, kb, fan_in, fan_out):
        # Mimic torch.nn.Linear default init: U(-1/sqrt(fan_in), 1/sqrt(fan_in))
        bound = 1.0 / (fan_in ** 0.5)
        w = jax.random.uniform(kw, (fan_in, fan_out), jnp.float32, -bound, bound)
        b = jax.random.uniform(kb, (1, fan_out), jnp.float32, -bound, bound)
        return w, b

    w1, b1 = linear(ks[0], ks[1], input_size, hidden1_size)
    w2, b2 = linear(ks[2], ks[3], hidden1_size, hidden2_size)
    w3, b3 = linear(ks[4], ks[5], hidden2_size, num_classes)
    return dict(w1=w1, b1=b1, w2=w2, b2=b2, w3=w3, b3=b3)


def mlp_reference(x, params):
    h1 = jax.nn.sigmoid(x @ params["w1"] + params["b1"])
    h2 = jax.nn.sigmoid(h1 @ params["w2"] + params["b2"])
    h3 = jax.nn.sigmoid(h2 @ params["w3"] + params["b3"])
    return h3.reshape(-1)


# ---------------------------------------------------------------------------
# Demo / self-test
# ---------------------------------------------------------------------------
if __name__ == "__main__":
    key = jax.random.PRNGKey(0)
    k_x, k_p = jax.random.split(key)

    batch, input_size, hidden1, hidden2, num_classes = 8, 32, 64, 32, 4
    x = jax.random.normal(k_x, (batch, input_size), jnp.float32)
    params = init_params(k_p, input_size, hidden1, hidden2, num_classes)

    out = mlp_forward(x, params)
    out = jax.block_until_ready(out)

    ref = mlp_reference(x, params)
    assert out.shape == (batch * num_classes,)
    # bf16 MXU inputs -> widened tolerance vs. the pure-f32 reference.
    assert jnp.allclose(out, ref, atol=3e-2, rtol=3e-2), (
        float(jnp.max(jnp.abs(out - ref))))

    print("KERNEL_OK")
</pallas_src>

<mosaic_0001>
module attributes {stable_mosaic.version = 11 : i64} {
  func.func @mlp_kernel(%arg0: i32, %arg1: memref<16x128xbf16, #tpu.memory_space<vmem>>, %arg2: memref<128x128xbf16, #tpu.memory_space<vmem>>, %arg3: memref<1x128xf32, #tpu.memory_space<vmem>>, %arg4: memref<128x128xbf16, #tpu.memory_space<vmem>>, %arg5: memref<1x128xf32, #tpu.memory_space<vmem>>, %arg6: memref<128x128xbf16, #tpu.memory_space<vmem>>, %arg7: memref<1x128xf32, #tpu.memory_space<vmem>>, %arg8: memref<16x128xf32, #tpu.memory_space<vmem>>) attributes {dimension_semantics = [#tpu.dimension_semantics<parallel>], iteration_bounds = array<i64: 1>, scalar_prefetch = 0 : i64, scratch_operands = 0 : i64, tpu.core_type = #tpu.core_type<tc>, window_params = [{transform_indices = @transform_0, window_bounds = array<i64: 16, 128>}, {pipeline_mode = #tpu.pipeline_mode<synchronous>, transform_indices = @transform_1, window_bounds = array<i64: 128, 128>}, {pipeline_mode = #tpu.pipeline_mode<synchronous>, transform_indices = @transform_2, window_bounds = array<i64: 1, 128>}, {pipeline_mode = #tpu.pipeline_mode<synchronous>, transform_indices = @transform_3, window_bounds = array<i64: 128, 128>}, {pipeline_mode = #tpu.pipeline_mode<synchronous>, transform_indices = @transform_4, window_bounds = array<i64: 1, 128>}, {pipeline_mode = #tpu.pipeline_mode<synchronous>, transform_indices = @transform_5, window_bounds = array<i64: 128, 128>}, {pipeline_mode = #tpu.pipeline_mode<synchronous>, transform_indices = @transform_6, window_bounds = array<i64: 1, 128>}, {transform_indices = @transform_7, window_bounds = array<i64: 16, 128>}]} {
    %c0 = arith.constant 0 : index
    %c0_0 = arith.constant 0 : index
    %0 = vector.load %arg1[%c0, %c0_0] : memref<16x128xbf16, #tpu.memory_space<vmem>>, vector<16x128xbf16>
    %c0_1 = arith.constant 0 : index
    %c0_2 = arith.constant 0 : index
    %1 = vector.load %arg2[%c0_1, %c0_2] : memref<128x128xbf16, #tpu.memory_space<vmem>>, vector<128x128xbf16>
    %cst = arith.constant dense<0.000000e+00> : vector<16x128xf32>
    %2 = tpu.matmul %0, %1, %cst {dimension_numbers = #tpu.dot_dimension_numbers<[1], [0], [0], [1], [0, 0, 1, 1], [], []>} : vector<16x128xbf16>, vector<128x128xbf16>, vector<16x128xf32> -> vector<16x128xf32>
    %c0_3 = arith.constant 0 : index
    %c0_4 = arith.constant 0 : index
    %3 = vector.load %arg3[%c0_3, %c0_4] : memref<1x128xf32, #tpu.memory_space<vmem>>, vector<1x128xf32>
    %4 = vector.broadcast %3 : vector<1x128xf32> to vector<16x128xf32>
    %5 = arith.addf %2, %4 : vector<16x128xf32>
    %6 = arith.negf %5 : vector<16x128xf32>
    %7 = math.exp %6 : vector<16x128xf32>
    %cst_5 = arith.constant 1.000000e+00 : f32
    %8 = vector.broadcast %cst_5 : f32 to vector<16x128xf32>
    %9 = arith.addf %8, %7 : vector<16x128xf32>
    %10 = arith.divf %8, %9 : vector<16x128xf32>
    %11 = arith.truncf %10 : vector<16x128xf32> to vector<16x128xbf16>
    %c0_6 = arith.constant 0 : index
    %c0_7 = arith.constant 0 : index
    %12 = vector.load %arg4[%c0_6, %c0_7] : memref<128x128xbf16, #tpu.memory_space<vmem>>, vector<128x128xbf16>
    %cst_8 = arith.constant dense<0.000000e+00> : vector<16x128xf32>
    %13 = tpu.matmul %11, %12, %cst_8 {dimension_numbers = #tpu.dot_dimension_numbers<[1], [0], [0], [1], [0, 0, 1, 1], [], []>} : vector<16x128xbf16>, vector<128x128xbf16>, vector<16x128xf32> -> vector<16x128xf32>
    %c0_9 = arith.constant 0 : index
    %c0_10 = arith.constant 0 : index
    %14 = vector.load %arg5[%c0_9, %c0_10] : memref<1x128xf32, #tpu.memory_space<vmem>>, vector<1x128xf32>
    %15 = vector.broadcast %14 : vector<1x128xf32> to vector<16x128xf32>
    %16 = arith.addf %13, %15 : vector<16x128xf32>
    %17 = arith.negf %16 : vector<16x128xf32>
    %18 = math.exp %17 : vector<16x128xf32>
    %cst_11 = arith.constant 1.000000e+00 : f32
    %19 = vector.broadcast %cst_11 : f32 to vector<16x128xf32>
    %20 = arith.addf %19, %18 : vector<16x128xf32>
    %21 = arith.divf %19, %20 : vector<16x128xf32>
    %22 = arith.truncf %21 : vector<16x128xf32> to vector<16x128xbf16>
    %c0_12 = arith.constant 0 : index
    %c0_13 = arith.constant 0 : index
    %23 = vector.load %arg6[%c0_12, %c0_13] : memref<128x128xbf16, #tpu.memory_space<vmem>>, vector<128x128xbf16>
    %cst_14 = arith.constant dense<0.000000e+00> : vector<16x128xf32>
    %24 = tpu.matmul %22, %23, %cst_14 {dimension_numbers = #tpu.dot_dimension_numbers<[1], [0], [0], [1], [0, 0, 1, 1], [], []>} : vector<16x128xbf16>, vector<128x128xbf16>, vector<16x128xf32> -> vector<16x128xf32>
    %c0_15 = arith.constant 0 : index
    %c0_16 = arith.constant 0 : index
    %25 = vector.load %arg7[%c0_15, %c0_16] : memref<1x128xf32, #tpu.memory_space<vmem>>, vector<1x128xf32>
    %26 = vector.broadcast %25 : vector<1x128xf32> to vector<16x128xf32>
    %27 = arith.addf %24, %26 : vector<16x128xf32>
    %28 = arith.negf %27 : vector<16x128xf32>
    %29 = math.exp %28 : vector<16x128xf32>
    %cst_17 = arith.constant 1.000000e+00 : f32
    %30 = vector.broadcast %cst_17 : f32 to vector<16x128xf32>
    %31 = arith.addf %30, %29 : vector<16x128xf32>
    %32 = arith.divf %30, %31 : vector<16x128xf32>
    %c0_18 = arith.constant 0 : index
    %c0_19 = arith.constant 0 : index
    %33 = vector.load %arg8[%c0_18, %c0_19] : memref<16x128xf32, #tpu.memory_space<vmem>>, vector<16x128xf32>
    tpu.vector_store %arg8[%c0_18, %c0_19], %32 {strides = array<i32>} : memref<16x128xf32, #tpu.memory_space<vmem>>, vector<16x128xf32>,
    return
  }
  func.func @transform_0(%arg0: i32) -> (i32, i32) {
    %c0_i32 = arith.constant 0 : i32
    %c0_i32_0 = arith.constant 0 : i32
    return %arg0, %c0_i32 : i32, i32
  }
  func.func @transform_1(%arg0: i32) -> (i32, i32) {
    %c0_i32 = arith.constant 0 : i32
    %c0_i32_0 = arith.constant 0 : i32
    %c0_i32_1 = arith.constant 0 : i32
    return %c0_i32, %c0_i32_0 : i32, i32
  }
  func.func @transform_2(%arg0: i32) -> (i32, i32) {
    %c0_i32 = arith.constant 0 : i32
    %c0_i32_0 = arith.constant 0 : i32
    %c0_i32_1 = arith.constant 0 : i32
    return %c0_i32, %c0_i32_0 : i32, i32
  }
  func.func @transform_3(%arg0: i32) -> (i32, i32) {
    %c0_i32 = arith.constant 0 : i32
    %c0_i32_0 = arith.constant 0 : i32
    %c0_i32_1 = arith.constant 0 : i32
    return %c0_i32, %c0_i32_0 : i32, i32
  }
  func.func @transform_4(%arg0: i32) -> (i32, i32) {
    %c0_i32 = arith.constant 0 : i32
    %c0_i32_0 = arith.constant 0 : i32
    %c0_i32_1 = arith.constant 0 : i32
    return %c0_i32, %c0_i32_0 : i32, i32
  }
  func.func @transform_5(%arg0: i32) -> (i32, i32) {
    %c0_i32 = arith.constant 0 : i32
    %c0_i32_0 = arith.constant 0 : i32
    %c0_i32_1 = arith.constant 0 : i32
    return %c0_i32, %c0_i32_0 : i32, i32
  }
  func.func @transform_6(%arg0: i32) -> (i32, i32) {
    %c0_i32 = arith.constant 0 : i32
    %c0_i32_0 = arith.constant 0 : i32
    %c0_i32_1 = arith.constant 0 : i32
    return %c0_i32, %c0_i32_0 : i32, i32
  }
  func.func @transform_7(%arg0: i32) -> (i32, i32) {
    %c0_i32 = arith.constant 0 : i32
    %c0_i32_0 = arith.constant 0 : i32
    return %arg0, %c0_i32 : i32, i32
  }
}

</mosaic_0001>

<bundles_post_ra>
// kernel: tpu_custom_call.1
= control target key start
LH: loop header
LB: loop body
LE: loop exit
PB: predicated region body
PF: predicated region fallthrough
CT: control target
= control target key end

     0   :  { %12 = vsyncpa [#allocation3], 0  ;;  %s961_s0 = inlined_call_operand.hbm [shape: bf16[16,128], index: 0, kind: input, shape index: {}]   ;;  %s962_s1 = inlined_call_operand.hbm [shape: bf16[128,128], index: 1, kind: input, shape index: {}]   ;;  %s963_s2 = inlined_call_operand.vmem [shape: f32[1,128], index: 2, kind: input, shape index: {}]   ;;  %s964_s3 = inlined_call_operand.hbm [shape: bf16[128,128], index: 3, kind: input, shape index: {}]   ;;  %s965_s4 = inlined_call_operand.vmem [shape: f32[1,128], index: 4, kind: input, shape index: {}]   ;;  %s966_s5 = inlined_call_operand.hbm [shape: bf16[128,128], index: 5, kind: input, shape index: {}]   ;;  %s967_s6 = inlined_call_operand.vmem [shape: f32[1,128], index: 6, kind: input, shape index: {}]   ;;  %s968_s7 = inlined_call_operand.hbm [shape: f32[16,128], index: 7, kind: output, shape index: {}]  }
   0x1   :  { %13 = vsyncpa [#allocation6], 0 }
   0x2   :  { %14 = vsyncpa [#allocation9], 0 }
   0x3   :  { %15 = vsyncpa [#allocation4], 0  ;;  %s785_s24 = smov [#allocation5]   ;;  %s786_s26 = smov [#allocation2]  }
   0x4   :  { %s33_s25 = sshll.u32 %s785_s24, 4  ;;  %s21_s27 = sshll.u32 %s786_s26, 4  ;;  %s34_s25 = int_to_ptr.vmem [resolvable:$true] %s33_s25  ;;  %s836_s27 = int_to_ptr.vmem [resolvable:$true] %s21_s27 }
   0x5   :  { %s667_s30 = scalar_lea.hbm %s962_s1, 1024 }
   0x6   :  { %p668_p0 = scmp.ne.s32.totalorder %s962_s1, %s667_s30  ;;  %p671_p1 = scmp.lt.u32.totalorder %s667_s30, %s962_s1 }
   0x8   :  { %p673_p2 = pnand %p671_p1, %p668_p0 }
   0xa   :  { %676 = shalt.err (!%p673_p2)
}
   0xb   :  { %s677_s12 = scalar_lea.vmem %s34_s25, 1024  ;;  %p682_p4 = scmp.lt.s32.totalorder %s34_s25, %s34_s25 }
   0xc   :  { %p678_p3 = scmp.ne.s32.totalorder %s34_s25, %s677_s12  ;;  %p683_p5 = scmp.lt.s32.totalorder %s677_s12, %s677_s12 }
   0xe   :  { %p684_p6 = por %p683_p5, %p682_p4 }
  0x10   :  { %p685_p7 = pnand %p684_p6, %p678_p3 }
  0x12   :  { %688 = shalt.err (!%p685_p7)
}
  0x13   :  { %s787_s13 = smov 64   ;;  %s788_s14 = smov 4  }
  0x14   :  { %39 = dma.hbm_to_vmem [thread:$0]  %s962_s1, 1024, %s34_s25, [#allocation6], %s787_s13, %s787_s13, %s788_s14  }
  0x15   :  { %s689_s19 = scalar_lea.hbm %s961_s0, 128 }
  0x16   :  { %p690_p8 = scmp.ne.s32.totalorder %s961_s0, %s689_s19  ;;  %p693_p9 = scmp.lt.u32.totalorder %s689_s19, %s961_s0 }
  0x18   :  { %p695_p10 = pnand %p693_p9, %p690_p8 }
  0x1a   :  { %698 = shalt.err (!%p695_p10)
}
  0x1b   :  { %s699_s24 = scalar_lea.vmem %s836_s27, 128  ;;  %p704_p12 = scmp.lt.s32.totalorder %s836_s27, %s836_s27 }
  0x1c   :  { %p700_p11 = scmp.ne.s32.totalorder %s836_s27, %s699_s24  ;;  %p705_p13 = scmp.lt.s32.totalorder %s699_s24, %s699_s24 }
  0x1e   :  { %p706_p0 = por %p705_p13, %p704_p12 }
  0x20   :  { %p707_p1 = pnand %p706_p0, %p700_p11 }
  0x22   :  { %710 = shalt.err (!%p707_p1)
}
  0x23   :  { %27 = dma.hbm_to_vmem [thread:$0]  %s961_s0, 128, %s836_s27, [#allocation3], %s787_s13, %s787_s13, %s788_s14  }
  0x24   :  { %s789_s26 = smov [#allocation7]   ;;  %s790_s29 = smov [#allocation8]  }
  0x25   :  { %s47_s28 = sshll.u32 %s789_s26, 4  ;;  %s61_s30 = sshll.u32 %s790_s29, 4  ;;  %s48_s28 = int_to_ptr.vmem [resolvable:$true] %s47_s28  ;;  %s873_s30 = int_to_ptr.vmem [resolvable:$true] %s61_s30 }
  0x26   :  { %s711_s10 = scalar_lea.hbm %s964_s3, 1024 }
  0x27   :  { %p712_p2 = scmp.ne.s32.totalorder %s964_s3, %s711_s10  ;;  %p715_p3 = scmp.lt.u32.totalorder %s711_s10, %s964_s3 }
  0x29   :  { %p717_p4 = pnand %p715_p3, %p712_p2 }
  0x2b   :  { %720 = shalt.err (!%p717_p4)
}
  0x2c   :  { %s721_s0 = scalar_lea.vmem %s48_s28, 1024  ;;  %p726_p6 = scmp.lt.s32.totalorder %s48_s28, %s48_s28 }
  0x2d   :  { %p722_p5 = scmp.ne.s32.totalorder %s48_s28, %s721_s0  ;;  %p727_p7 = scmp.lt.s32.totalorder %s721_s0, %s721_s0 }
  0x2f   :  { %p728_p8 = por %p727_p7, %p726_p6 }
  0x31   :  { %p729_p9 = pnand %p728_p8, %p722_p5 }
  0x33   :  { %732 = shalt.err (!%p729_p9)
}
  0x34   :  { %53 = dma.hbm_to_vmem [thread:$0]  %s964_s3, 1024, %s48_s28, [#allocation6], %s787_s13, %s787_s13, %s788_s14  }
  0x35   :  { %s733_s20 = scalar_lea.hbm %s966_s5, 1024 }
  0x36   :  { %p734_p10 = scmp.ne.s32.totalorder %s966_s5, %s733_s20  ;;  %p737_p11 = scmp.lt.u32.totalorder %s733_s20, %s966_s5 }
  0x38   :  { %p739_p12 = pnand %p737_p11, %p734_p10 }
  0x3a   :  { %742 = shalt.err (!%p739_p12)
}
  0x3b   :  { %s743_s1 = scalar_lea.vmem %s873_s30, 1024  ;;  %p748_p0 = scmp.lt.s32.totalorder %s873_s30, %s873_s30 }
  0x3c   :  { %p744_p13 = scmp.ne.s32.totalorder %s873_s30, %s743_s1  ;;  %p749_p1 = scmp.lt.s32.totalorder %s743_s1, %s743_s1 }
  0x3e   :  { %p750_p2 = por %p749_p1, %p748_p0 }
  0x40   :  { %p751_p3 = pnand %p750_p2, %p744_p13 }
  0x42   :  { %754 = shalt.err (!%p751_p3)
}
  0x43   :  { %67 = dma.hbm_to_vmem [thread:$0]  %s966_s5, 1024, %s873_s30, [#allocation9], %s787_s13, %s787_s13, %s788_s14  }
  0x44   :  { %777 = dma.done.wait [#allocation3], 128  }
  0x45   :  { %778 = vsyncadd [#allocation3], 4294967168 }
  0x46   :  { %779 = dma.done.wait [#allocation6], 2048  }
  0x47   :  { %780 = vsyncadd [#allocation6], 4294965248 }
  0x48   :  { %781 = dma.done.wait [#allocation9], 1024  }
  0x49   :  { %782 = vsyncadd [#allocation9], 4294966272  ;;  %v791_v0 = vmov 0.0   ;;  %vm792_vm0 = vmmov 0   ;;  %v618_v1 = vld [vmem:[#allocation5] sm:$0xff]   ;;  %v619_v2 = vld [vmem:[#allocation5 + $0x8] sm:$0xff]  }
  0x4a   :  { %547 = vmatprep.subr.bf16.mxu0 %v791_v0  ;;  %563 = vmatprep.mubr.msk.bf16.mxu0 %vm792_vm0, %v791_v0  ;;  %v620_v3 = vld [vmem:[#allocation5 + $0x10] sm:$0xff]   ;;  %v621_v4 = vld [vmem:[#allocation5 + $0x18] sm:$0xff]   ;;  %v622_v5 = vld [vmem:[#allocation5 + $0x20] sm:$0xff]   ;;  %s793_s28 = smov [#allocation10]  }
  0x4b   :  { %567 = vmatprep.subr.bf16.mxu1 %v791_v0  ;;  %583 = vmatprep.mubr.msk.bf16.mxu1 %vm792_vm0, %v791_v0  ;;  %v623_v6 = vld [vmem:[#allocation5 + $0x28] sm:$0xff]   ;;  %v624_v7 = vld [vmem:[#allocation5 + $0x30] sm:$0xff]   ;;  %v625_v8 = vld [vmem:[#allocation5 + $0x38] sm:$0xff]   ;;  %s472_s29 = sshll.u32 %s793_s28, 4  ;;  %s473_s29 = int_to_ptr.vmem [resolvable:$true] %s472_s29 }
  0x4c   :  { %548 = vmatpush3.bf16.msra.mxu0 %v618_v1  ;;  %v626_v9 = vld [vmem:[#allocation2] sm:$0xff]   ;;  %v627_v10 = vld [vmem:[#allocation7] sm:$0xff]   ;;  %v628_v11 = vld [vmem:[#allocation7 + $0x8] sm:$0xff]   ;;  %p760_p5 = scmp.lt.s32.totalorder %s473_s29, %s473_s29 }
  0x4d   :  { %549 = vmatprep.subr.bf16.mxu0 %v791_v0  ;;  %568 = vmatpush3.bf16.msra.mxu1 %v627_v10  ;;  %v629_v12 = vld [vmem:[#allocation7 + $0x10] sm:$0xff]   ;;  %v630_v13 = vld [vmem:[#allocation7 + $0x18] sm:$0xff]   ;;  %v631_v14 = vld [vmem:[#allocation7 + $0x20] sm:$0xff]  }
  0x4e   :  { %569 = vmatprep.subr.bf16.mxu1 %v791_v0  ;;  %v632_v15 = vld [vmem:[#allocation7 + $0x28] sm:$0xff]   ;;  %v633_v16 = vld [vmem:[#allocation7 + $0x30] sm:$0xff]   ;;  %v634_v17 = vld [vmem:[#allocation7 + $0x38] sm:$0xff]  }
  0x4f   :  { %v486_v18 = vld [vmem:[%s963_s2] ss:$0 sm:$0xff]  ;;  %v635_v34 = vld [vmem:[#allocation8] sm:$0xff]   ;;  %v636_v35 = vld [vmem:[#allocation8 + $0x8] sm:$0xff]  }
  0x50   :  { %550 = vmatpush3.bf16.msra.mxu0 %v619_v2  ;;  %v637_v36 = vld [vmem:[#allocation8 + $0x10] sm:$0xff]   ;;  %v638_v37 = vld [vmem:[#allocation8 + $0x18] sm:$0xff]   ;;  %v639_v38 = vld [vmem:[#allocation8 + $0x20] sm:$0xff]  }
  0x51   :  { %551 = vmatprep.subr.bf16.mxu0 %v791_v0  ;;  %570 = vmatpush3.bf16.msra.mxu1 %v628_v11  ;;  %v640_v39 = vld [vmem:[#allocation8 + $0x28] sm:$0xff]   ;;  %v641_v40 = vld [vmem:[#allocation8 + $0x30] sm:$0xff]   ;;  %v642_v41 = vld [vmem:[#allocation8 + $0x38] sm:$0xff]  }
  0x52   :  { %571 = vmatprep.subr.bf16.mxu1 %v791_v0  ;;  %v498_v42 = vld [vmem:[%s965_s4] ss:$0 sm:$0xff] }
  0x53   :  { %v509_v58 = vld [vmem:[%s967_s6] ss:$0 sm:$0xff]  ;;  %s755_s6 = scalar_lea.vmem %s473_s29, 256 }
  0x54   :  { %552 = vmatpush3.bf16.msra.mxu0 %v620_v3  ;;  %p756_p4 = scmp.ne.s32.totalorder %s473_s29, %s755_s6  ;;  %p761_p6 = scmp.lt.s32.totalorder %s755_s6, %s755_s6 }
  0x55   :  { %553 = vmatprep.subr.bf16.mxu0 %v791_v0  ;;  %572 = vmatpush3.bf16.msra.mxu1 %v629_v12 }
  0x56   :  { %573 = vmatprep.subr.bf16.mxu1 %v791_v0  ;;  %p762_p7 = por %p761_p6, %p760_p5 }
  0x58   :  { %554 = vmatpush3.bf16.msra.mxu0 %v621_v4  ;;  %p763_p8 = pnand %p762_p7, %p756_p4 }
  0x59   :  { %555 = vmatprep.subr.bf16.mxu0 %v791_v0  ;;  %574 = vmatpush3.bf16.msra.mxu1 %v630_v13 }
  0x5a   :  { %575 = vmatprep.subr.bf16.mxu1 %v791_v0 }
  0x5c   :  { %556 = vmatpush3.bf16.msra.mxu0 %v622_v5 }
  0x5d   :  { %557 = vmatprep.subr.bf16.mxu0 %v791_v0  ;;  %576 = vmatpush3.bf16.msra.mxu1 %v631_v14 }
  0x5e   :  { %577 = vmatprep.subr.bf16.mxu1 %v791_v0 }
  0x60   :  { %558 = vmatpush3.bf16.msra.mxu0 %v623_v6 }
  0x61   :  { %559 = vmatprep.subr.bf16.mxu0 %v791_v0  ;;  %578 = vmatpush3.bf16.msra.mxu1 %v632_v15 }
  0x62   :  { %579 = vmatprep.subr.bf16.mxu1 %v791_v0 }
  0x64   :  { %560 = vmatpush3.bf16.msra.mxu0 %v624_v7 }
  0x65   :  { %561 = vmatprep.subr.bf16.mxu0 %v791_v0  ;;  %580 = vmatpush3.bf16.msra.mxu1 %v633_v16 }
  0x66   :  { %581 = vmatprep.subr.bf16.mxu1 %v791_v0 }
  0x68   :  { %562 = vmatpush3.bf16.msra.mxu0 %v625_v8 }
  0x69   :  { %587 = vmatprep.subr.bf16.mxu0 %v791_v0  ;;  %582 = vmatpush3.bf16.msra.mxu1 %v634_v17 }
  0x6b   :  { %564 = vmatmul.mubr.bf16.vlgmr.msra.gmra.mrb[0].mxu0 %v626_v9 }
  0x6c   :  { %603 = vmatprep.mubr.msk.bf16.mxu0 %vm792_vm0, %v791_v0  ;;  %588 = vmatpush3.bf16.msra.mxu0 %v635_v34 }
  0x6d   :  { %589 = vmatprep.subr.bf16.mxu0 %v791_v0 }
  0x70   :  { %590 = vmatpush3.bf16.msra.mxu0 %v636_v35 }
  0x71   :  { %591 = vmatprep.subr.bf16.mxu0 %v791_v0 }
  0x74   :  { %592 = vmatpush3.bf16.msra.mxu0 %v637_v36 }
  0x75   :  { %593 = vmatprep.subr.bf16.mxu0 %v791_v0 }
  0x78   :  { %594 = vmatpush3.bf16.msra.mxu0 %v638_v37 }
  0x79   :  { %595 = vmatprep.subr.bf16.mxu0 %v791_v0 }
  0x7c   :  { %596 = vmatpush3.bf16.msra.mxu0 %v639_v38 }
  0x7d   :  { %597 = vmatprep.subr.bf16.mxu0 %v791_v0 }
  0x80   :  { %598 = vmatpush3.bf16.msra.mxu0 %v640_v39 }
  0x81   :  { %599 = vmatprep.subr.bf16.mxu0 %v791_v0 }
  0x84   :  { %600 = vmatpush3.bf16.msra.mxu0 %v641_v40 }
  0x85   :  { %601 = vmatprep.subr.bf16.mxu0 %v791_v0 }
  0x88   :  { %602 = vmatpush3.bf16.msra.mxu0 %v642_v41 }
 0x13e   :  { %v196_v19 = vpop.f32.mrb[0].mxu0 }
 0x13f   :  { %v197_v20 = vadd.f32 %v486_v18, %v196_v19  ;;  %v565_v21 = vpop.f32.mrb[1].mxu0 }
 0x140   :  { %v199_v22 = vpop.f32.mrb[2].mxu0 }
 0x141   :  { %v496_v23 = vmul.f32 -1.442695, %v197_v20  ;;  %v200_v24 = vadd.f32 %v486_v18, %v199_v22  ;;  %v566_v25 = vpop.f32.mrb[3].mxu0 }
 0x143   :  { %643 = vpow2.f32 %v496_v23  ;;  %v497_v26 = vmul.f32 -1.442695, %v200_v24 }
 0x145   :  { %645 = vpow2.f32 %v497_v26 }
 0x14d   :  { %v644_v27 = vpop.eup %643 }
 0x14e   :  { %v209_v28 = vadd.f32 1.0, %v644_v27 }
 0x14f   :  { %v646_v29 = vpop.eup %645 }
 0x150   :  { %v210_v30 = vadd.f32 1.0, %v646_v29  ;;  %647 = vrcp.f32 %v209_v28 }
 0x152   :  { %649 = vrcp.f32 %v210_v30 }
 0x15a   :  { %v648_v31 = vpop.eup %647 }
 0x15c   :  { %v650_v32 = vpop.eup %649 }
 0x15d   :  { %v215_v33 = vpack.c.bf16 %v650_v32, %v648_v31 }
 0x15f   :  { %584 = vmatmul.mubr.bf16.vlgmr.msra.gmra.mrb[0].mxu1 %v215_v33 }
 0x232   :  { %v321_v43 = vpop.f32.mrb[0].mxu1 }
 0x233   :  { %v322_v44 = vadd.f32 %v498_v42, %v321_v43  ;;  %v585_v45 = vpop.f32.mrb[1].mxu1 }
 0x234   :  { %v324_v46 = vpop.f32.mrb[2].mxu1 }
 0x235   :  { %v507_v47 = vmul.f32 -1.442695, %v322_v44  ;;  %v325_v48 = vadd.f32 %v498_v42, %v324_v46  ;;  %v586_v49 = vpop.f32.mrb[3].mxu1 }
 0x237   :  { %651 = vpow2.f32 %v507_v47  ;;  %v508_v50 = vmul.f32 -1.442695, %v325_v48 }
 0x239   :  { %653 = vpow2.f32 %v508_v50 }
 0x241   :  { %v652_v51 = vpop.eup %651 }
 0x242   :  { %v334_v52 = vadd.f32 1.0, %v652_v51 }
 0x243   :  { %v654_v53 = vpop.eup %653 }
 0x244   :  { %v335_v54 = vadd.f32 1.0, %v654_v53  ;;  %655 = vrcp.f32 %v334_v52 }
 0x246   :  { %657 = vrcp.f32 %v335_v54 }
 0x24e   :  { %v656_v55 = vpop.eup %655 }
 0x250   :  { %v658_v56 = vpop.eup %657 }
 0x251   :  { %v340_v57 = vpack.c.bf16 %v658_v56, %v656_v55 }
 0x253   :  { %604 = vmatmul.mubr.bf16.vlgmr.msra.gmra.mrb[4].mxu0 %v340_v57 }
 0x326   :  { %v446_v59 = vpop.f32.mrb[4].mxu0 }
 0x327   :  { %v447_v60 = vadd.f32 %v509_v58, %v446_v59  ;;  %v605_v61 = vpop.f32.mrb[5].mxu0 }
 0x328   :  { %v449_v62 = vpop.f32.mrb[6].mxu0 }
 0x329   :  { %v518_v63 = vmul.f32 -1.442695, %v447_v60  ;;  %v450_v0 = vadd.f32 %v509_v58, %v449_v62  ;;  %v606_v1 = vpop.f32.mrb[7].mxu0 }
 0x32b   :  { %659 = vpow2.f32 %v518_v63  ;;  %v519_v2 = vmul.f32 -1.442695, %v450_v0 }
 0x32d   :  { %661 = vpow2.f32 %v519_v2 }
 0x335   :  { %v660_v3 = vpop.eup %659 }
 0x336   :  { %v459_v4 = vadd.f32 1.0, %v660_v3 }
 0x337   :  { %v662_v5 = vpop.eup %661 }
 0x338   :  { %663 = vrcp.f32 %v459_v4  ;;  %v460_v6 = vadd.f32 1.0, %v662_v5 }
 0x33a   :  { %665 = vrcp.f32 %v460_v6 }
 0x342   :  { %v664_v7 = vpop.eup %663 }
 0x343   :  { %465 = vst [vmem:[#allocation10] sm:$0xff] %v664_v7 }
 0x344   :  { %v666_v8 = vpop.eup %665 }
 0x345   :  { %466 = vst [vmem:[#allocation10 + $0x8] sm:$0xff] %v666_v8 }
 0x346   :  { %766 = shalt.err (!%p763_p8)
}
 0x347   :  { %s767_s9 = scalar_lea.hbm %s968_s7, 256 }
 0x348   :  { %p768_p9 = scmp.ne.s32.totalorder %s968_s7, %s767_s9  ;;  %p771_p10 = scmp.lt.u32.totalorder %s767_s9, %s968_s7 }
 0x34a   :  { %p773_p11 = pnand %p771_p10, %p768_p9 }
 0x34c   :  { %776 = shalt.err (!%p773_p11)
}
 0x34d   :  { %s794_s16 = smov 128   ;;  %s795_s0 = smov 8  }
 0x34e   :  { %478 = dma.vmem_to_hbm [thread:$0]  %s473_s29, 256, %s968_s7, [#allocation4], %s794_s16, %s794_s16, %s795_s0  }
 0x34f   :  { %783 = dma.done.wait [#allocation4], 256  }
 0x350   :  { %784 = vsyncadd [#allocation4], 4294967040 }
 0x351   :  { %482 = vsyncpa [#allocation3], 1 }
 0x352   :  { %483 = vsyncpa [#allocation6], 1 }
 0x353   :  { %484 = vsyncpa [#allocation9], 1 }
 0x354   :  { %485 = vsyncpa [#allocation4], 1 }

</bundles_post_ra>
